<compile_context>
chip_gen: v5e
topology: v5e:2x2
jax: 0.10.0
libtpu: 0.0.40
codegen_flags: <defaults>
</compile_context>

<pallas_src>
import functools

import jax
import jax.numpy as jnp
from jax.experimental import pallas as pl
from jax.experimental.pallas import tpu as pltpu

EPS = 1e-6


# ------------------------------- kernels --------------------------------------
def _ln_kernel(x_ref, g_ref, b_ref, o_ref, *, inv_d, inv_nm1, eps):
    """Standard path: each block row is one LayerNorm row (used for D >= 128,
    or when lane-packing is not applicable)."""
    x = x_ref[...].astype(jnp.float32)                        # (bm, D)
    mean = jnp.sum(x, axis=-1, keepdims=True) * inv_d
    xm = x - mean                                             # computed once, reused
    var = jnp.sum(xm * xm, axis=-1, keepdims=True) * inv_nm1  # unbiased (ddof=1)
    denom = jnp.sqrt(var) + eps
    inv = pl.reciprocal(denom, approx=True)                   # EUP slot, not VPU divide
    inv = inv * (2.0 - denom * inv)                           # one Newton step -> ~f32 exact
    o_ref[...] = (g_ref[...] * (xm * inv) + b_ref[...]).astype(o_ref.dtype)


def _ln_packed_kernel(x_ref, g_ref, b_ref, ones_ref, o_ref, *, inv_d, inv_nm1, eps):
    """Lane-dense path for D < 128: each 128-lane row carries pack = 128 // D
    LayerNorm rows.  Per-segment sums come from a block-diagonal (128,128)
    ones matmul on the MXU (result is already broadcast across each segment)."""
    x = x_ref[...].astype(jnp.float32)                        # (bm, 128)
    ones_blk = ones_ref[...]                                  # (128, 128) block-diag
    mean = jnp.dot(x, ones_blk, preferred_element_type=jnp.float32) * inv_d
    xm = x - mean
    var = jnp.dot(xm * xm, ones_blk, preferred_element_type=jnp.float32) * inv_nm1
    denom = jnp.sqrt(var) + eps
    inv = pl.reciprocal(denom, approx=True)
    inv = inv * (2.0 - denom * inv)
    o_ref[...] = (g_ref[...] * (xm * inv) + b_ref[...]).astype(o_ref.dtype)


# ------------------------------- tiling ----------------------------------------
def _choose_rows(m_rows, row_bytes):
    """Byte-aware row tile.  ~2 MiB x-blocks sit in the measured 85%+ HBM
    roofline regime while double-buffered in+out stays far below every
    generation's scoped VMEM (v7x: 64 MiB physical / 32 MiB default per TC).
    Returns (bm, m_padded)."""
    target = 2 << 20                                     # bytes of x per block
    bm = max(8, (target // max(row_bytes, 1)) // 8 * 8)
    total = m_rows * row_bytes
    if bm >= m_rows:
        # Fits in one block.  Split into >=2 grid steps when the problem is
        # big enough that a second TensorCore (v7x) pays for itself.
        if total > (1 << 20) and m_rows >= 16:
            bm = max(8, ((m_rows + 1) // 2 + 7) // 8 * 8)
        else:
            return m_rows, m_rows                        # single full-extent block
    m_pad = ((m_rows + bm - 1) // bm) * bm               # pad rows; no OOM fallback
    return bm, m_pad


def _run(kernel, x2, extras, out_dtype, flops, transcendentals):
    m, d_lanes = x2.shape
    row_bytes = int(d_lanes * x2.dtype.itemsize)
    bm, m_pad = _choose_rows(m, row_bytes)
    if m_pad != m:
        x2 = jnp.pad(x2, ((0, m_pad - m), (0, 0)))       # padded rows sliced off below
    in_specs = [pl.BlockSpec((bm, d_lanes), lambda i: (i, 0))]
    in_specs += [pl.BlockSpec(a.shape, lambda i: (0, 0)) for a in extras]
    out = pl.pallas_call(
        kernel,
        out_shape=jax.ShapeDtypeStruct((m_pad, d_lanes), out_dtype),
        grid=(m_pad // bm,),
        in_specs=in_specs,
        out_specs=pl.BlockSpec((bm, d_lanes), lambda i: (i, 0)),
        compiler_params=pltpu.CompilerParams(
            dimension_semantics=("parallel",),
            vmem_limit_bytes=32 * 1024 * 1024),
        cost_estimate=pl.CostEstimate(
            flops=int(flops),
            transcendentals=int(transcendentals),
            bytes_accessed=int(2 * m_pad * row_bytes)),
    )(x2, *extras)
    return out[:m] if m_pad != m else out


# ------------------------------- wrapper ----------------------------------------
def layer_norm(x, a_2, b_2, eps=EPS):
    """LayerNorm over the last axis with the reference module's semantics
    (unbiased std, eps added to std, output keeps the input dtype)."""
    orig_shape = x.shape
    d = orig_shape[-1]
    m = x.size // d
    x2 = x.reshape(m, d)                                  # keep input dtype for HBM I/O
    inv_d = 1.0 / d
    inv_nm1 = 1.0 / max(d - 1, 1)                         # guard degenerate d == 1

    pack = 128 // d if (d < 128 and 128 % d == 0) else 1
    if pack > 1 and m % pack == 0:
        # Lane-dense path: 128/D x more useful lanes per vreg, unmasked stores.
        dp = d * pack                                     # == 128
        xp = x2.reshape(m // pack, dp)                    # free, row-major reshape
        g = jnp.tile(a_2.reshape(1, d).astype(jnp.float32), (1, pack))
        b = jnp.tile(b_2.reshape(1, d).astype(jnp.float32), (1, pack))
        seg = jnp.arange(dp, dtype=jnp.int32) // d
        ones_blk = (seg[:, None] == seg[None, :]).astype(jnp.float32)
        kernel = functools.partial(_ln_packed_kernel,
                                   inv_d=inv_d, inv_nm1=inv_nm1, eps=eps)
        flops = 7 * m * d + 4 * (m // pack) * dp * dp
        out = _run(kernel, xp, (g, b, ones_blk), x.dtype, flops, 2 * m)
        return out.reshape(orig_shape)

    g = a_2.reshape(1, d).astype(jnp.float32)
    b = b_2.reshape(1, d).astype(jnp.float32)
    kernel = functools.partial(_ln_kernel, inv_d=inv_d, inv_nm1=inv_nm1, eps=eps)
    out = _run(kernel, x2, (g, b), x.dtype, 7 * m * d, 2 * m)
    return out.reshape(orig_shape)


# ------------------------------ reference ----------------------------------------
def _reference(x, g, b, eps=EPS):
    x = x.astype(jnp.float32)
    mean = jnp.mean(x, axis=-1, keepdims=True)
    var = jnp.sum((x - mean) ** 2, axis=-1, keepdims=True) / max(x.shape[-1] - 1, 1)
    std = jnp.sqrt(var)
    return g.astype(jnp.float32) * (x - mean) / (std + eps) + b.astype(jnp.float32)


# --------------------------------- main -------------------------------------------
if __name__ == "__main__":
    key = jax.random.PRNGKey(0)
    k1, k2, k3, k4, k5 = jax.random.split(key, 5)

    # Small shape consistent with the module: (batch=2, seq=8, features=32).
    B, L, D = 2, 8, 32
    x = jax.random.normal(k1, (B, L, D), jnp.float32)
    a_2 = 1.0 + 0.1 * jax.random.normal(k4, (D,), jnp.float32)
    b_2 = 0.1 * jax.random.normal(k5, (D,), jnp.float32)

    out = jax.block_until_ready(layer_norm(x, a_2, b_2))
    assert out.shape == x.shape and out.dtype == x.dtype
    ref = _reference(x, a_2, b_2)
    assert jnp.allclose(out, ref, rtol=1e-2, atol=1e-2), "mismatch (small, packed)"

    # Larger awkward-M slab -> packed path, 2 grid steps, row padding.
    x_big = jax.random.normal(k2, (1041, 8, D), jnp.float32)
    out_big = jax.block_until_ready(layer_norm(x_big, a_2, b_2))
    ref_big = _reference(x_big, a_2, b_2)
    assert jnp.allclose(out_big, ref_big, rtol=1e-2, atol=1e-2), "mismatch (tiled, padded)"

    # bf16 input with D >= 128 -> unpacked kernel, HBM I/O stays bf16.
    D2 = 256
    xb = jax.random.normal(k3, (2, 64, D2), jnp.float32).astype(jnp.bfloat16)
    g2 = jnp.ones((D2,), jnp.float32)
    b2 = jnp.zeros((D2,), jnp.float32)
    out_bf = jax.block_until_ready(layer_norm(xb, g2, b2))
    assert out_bf.dtype == jnp.bfloat16
    ref_bf = _reference(xb.astype(jnp.float32), g2, b2)
    assert jnp.allclose(out_bf.astype(jnp.float32), ref_bf, rtol=2e-2, atol=2e-2), \
        "mismatch (bf16, unpacked)"

    # M not divisible by the packing factor -> unpacked fallback for D < 128.
    x_odd = jax.random.normal(k2, (2, 7, D), jnp.float32)
    out_odd = jax.block_until_ready(layer_norm(x_odd, a_2, b_2))
    assert jnp.allclose(out_odd, _reference(x_odd, a_2, b_2), rtol=1e-2, atol=1e-2), \
        "mismatch (odd-M fallback)"

    print("KERNEL_OK")
</pallas_src>

<mosaic_0001>
module attributes {stable_mosaic.version = 11 : i64} {
  func.func @_ln_packed_kernel(%arg0: i32, %arg1: memref<4x128xf32, #tpu.memory_space<vmem>>, %arg2: memref<1x128xf32, #tpu.memory_space<vmem>>, %arg3: memref<1x128xf32, #tpu.memory_space<vmem>>, %arg4: memref<128x128xf32, #tpu.memory_space<vmem>>, %arg5: memref<4x128xf32, #tpu.memory_space<vmem>>) attributes {dimension_semantics = [#tpu.dimension_semantics<parallel>], iteration_bounds = array<i64: 1>, scalar_prefetch = 0 : i64, scratch_operands = 0 : i64, tpu.core_type = #tpu.core_type<tc>, window_params = [{transform_indices = @transform_0, window_bounds = array<i64: 4, 128>}, {pipeline_mode = #tpu.pipeline_mode<synchronous>, transform_indices = @transform_1, window_bounds = array<i64: 1, 128>}, {pipeline_mode = #tpu.pipeline_mode<synchronous>, transform_indices = @transform_2, window_bounds = array<i64: 1, 128>}, {pipeline_mode = #tpu.pipeline_mode<synchronous>, transform_indices = @transform_3, window_bounds = array<i64: 128, 128>}, {transform_indices = @transform_4, window_bounds = array<i64: 4, 128>}]} {
    %c0 = arith.constant 0 : index
    %c0_0 = arith.constant 0 : index
    %0 = vector.load %arg1[%c0, %c0_0] : memref<4x128xf32, #tpu.memory_space<vmem>>, vector<4x128xf32>
    %c0_1 = arith.constant 0 : index
    %c0_2 = arith.constant 0 : index
    %1 = vector.load %arg4[%c0_1, %c0_2] : memref<128x128xf32, #tpu.memory_space<vmem>>, vector<128x128xf32>
    %cst = arith.constant dense<0.000000e+00> : vector<4x128xf32>
    %2 = tpu.matmul %0, %1, %cst {dimension_numbers = #tpu.dot_dimension_numbers<[1], [0], [0], [1], [0, 0, 1, 1], [], []>} : vector<4x128xf32>, vector<128x128xf32>, vector<4x128xf32> -> vector<4x128xf32>
    %cst_3 = arith.constant 3.125000e-02 : f32
    %3 = vector.broadcast %cst_3 : f32 to vector<4x128xf32>
    %4 = arith.mulf %2, %3 : vector<4x128xf32>
    %5 = arith.subf %0, %4 : vector<4x128xf32>
    %6 = arith.mulf %5, %5 : vector<4x128xf32>
    %cst_4 = arith.constant dense<0.000000e+00> : vector<4x128xf32>
    %7 = tpu.matmul %6, %1, %cst_4 {dimension_numbers = #tpu.dot_dimension_numbers<[1], [0], [0], [1], [0, 0, 1, 1], [], []>} : vector<4x128xf32>, vector<128x128xf32>, vector<4x128xf32> -> vector<4x128xf32>
    %cst_5 = arith.constant 0.0322580636 : f32
    %8 = vector.broadcast %cst_5 : f32 to vector<4x128xf32>
    %9 = arith.mulf %7, %8 : vector<4x128xf32>
    %10 = math.sqrt %9 : vector<4x128xf32>
    %cst_6 = arith.constant 9.99999997E-7 : f32
    %11 = vector.broadcast %cst_6 : f32 to vector<4x128xf32>
    %12 = arith.addf %10, %11 : vector<4x128xf32>
    %13 = tpu.reciprocal %12 {approx = true} : vector<4x128xf32> -> vector<4x128xf32>
    %14 = arith.mulf %12, %13 : vector<4x128xf32>
    %cst_7 = arith.constant 2.000000e+00 : f32
    %15 = vector.broadcast %cst_7 : f32 to vector<4x128xf32>
    %16 = arith.subf %15, %14 : vector<4x128xf32>
    %17 = arith.mulf %13, %16 : vector<4x128xf32>
    %c0_8 = arith.constant 0 : index
    %c0_9 = arith.constant 0 : index
    %18 = vector.load %arg2[%c0_8, %c0_9] : memref<1x128xf32, #tpu.memory_space<vmem>>, vector<1x128xf32>
    %19 = arith.mulf %5, %17 : vector<4x128xf32>
    %20 = vector.broadcast %18 : vector<1x128xf32> to vector<4x128xf32>
    %21 = arith.mulf %20, %19 : vector<4x128xf32>
    %c0_10 = arith.constant 0 : index
    %c0_11 = arith.constant 0 : index
    %22 = vector.load %arg3[%c0_10, %c0_11] : memref<1x128xf32, #tpu.memory_space<vmem>>, vector<1x128xf32>
    %23 = vector.broadcast %22 : vector<1x128xf32> to vector<4x128xf32>
    %24 = arith.addf %21, %23 : vector<4x128xf32>
    %c0_12 = arith.constant 0 : index
    %c0_13 = arith.constant 0 : index
    %25 = vector.load %arg5[%c0_12, %c0_13] : memref<4x128xf32, #tpu.memory_space<vmem>>, vector<4x128xf32>
    tpu.vector_store %arg5[%c0_12, %c0_13], %24 {strides = array<i32>} : memref<4x128xf32, #tpu.memory_space<vmem>>, vector<4x128xf32>,
    return
  }
  func.func @transform_0(%arg0: i32) -> (i32, i32) {
    %c0_i32 = arith.constant 0 : i32
    %c0_i32_0 = arith.constant 0 : i32
    return %arg0, %c0_i32 : i32, i32
  }
  func.func @transform_1(%arg0: i32) -> (i32, i32) {
    %c0_i32 = arith.constant 0 : i32
    %c0_i32_0 = arith.constant 0 : i32
    %c0_i32_1 = arith.constant 0 : i32
    return %c0_i32, %c0_i32_0 : i32, i32
  }
  func.func @transform_2(%arg0: i32) -> (i32, i32) {
    %c0_i32 = arith.constant 0 : i32
    %c0_i32_0 = arith.constant 0 : i32
    %c0_i32_1 = arith.constant 0 : i32
    return %c0_i32, %c0_i32_0 : i32, i32
  }
  func.func @transform_3(%arg0: i32) -> (i32, i32) {
    %c0_i32 = arith.constant 0 : i32
    %c0_i32_0 = arith.constant 0 : i32
    %c0_i32_1 = arith.constant 0 : i32
    return %c0_i32, %c0_i32_0 : i32, i32
  }
  func.func @transform_4(%arg0: i32) -> (i32, i32) {
    %c0_i32 = arith.constant 0 : i32
    %c0_i32_0 = arith.constant 0 : i32
    return %arg0, %c0_i32 : i32, i32
  }
}

</mosaic_0001>

<bundles_post_ra>
// kernel: tpu_custom_call.1
= control target key start
LH: loop header
LB: loop body
LE: loop exit
PB: predicated region body
PF: predicated region fallthrough
CT: control target
= control target key end

     0   :  { %9 = vsyncpa [#allocation3], 0  ;;  %s329_s0 = inlined_call_operand.hbm [shape: f32[4,128], index: 0, kind: input, shape index: {}]   ;;  %s330_s1 = inlined_call_operand.hbm [shape: f32[1,128], index: 1, kind: input, shape index: {}]   ;;  %s331_s2 = inlined_call_operand.vmem [shape: f32[1,128], index: 2, kind: input, shape index: {}]   ;;  %s332_s3 = inlined_call_operand.hbm [shape: f32[128,128], index: 3, kind: input, shape index: {}]   ;;  %s333_s4 = inlined_call_operand.hbm [shape: f32[4,128], index: 4, kind: output, shape index: {}]  }
   0x1   :  { %10 = vsyncpa [#allocation6], 0  ;;  %s28_s17 = sshll.u32 %s330_s1, 4  ;;  %s29_s17 = int_to_ptr.hbm [resolvable:$true] %s28_s17 }
   0x2   :  { %11 = vsyncpa [#allocation4], 0  ;;  %s283_s18 = smov [#allocation5]   ;;  %s17_s22 = sshll.u32 %s329_s0, 4  ;;  %s18_s22 = int_to_ptr.hbm [resolvable:$true] %s17_s22 }
   0x3   :  { %s30_s19 = sshll.u32 %s283_s18, 4  ;;  %s284_s23 = smov [#allocation2]   ;;  %s31_s19 = int_to_ptr.vmem [resolvable:$true] %s30_s19 }
   0x4   :  { %33 = dma.hbm_to_vmem [thread:$0]  %s29_s17, 16, %s31_s19, [#allocation6]  }
   0x5   :  { %s19_s24 = sshll.u32 %s284_s23, 4  ;;  %s40_s27 = sshll.u32 %s332_s3, 4  ;;  %s20_s24 = int_to_ptr.vmem [resolvable:$true] %s19_s24  ;;  %s41_s27 = int_to_ptr.hbm [resolvable:$true] %s40_s27 }
   0x6   :  { %22 = dma.hbm_to_vmem [thread:$0]  %s18_s22, 64, %s20_s24, [#allocation3]  }
   0x7   :  { %s285_s1 = smov [#allocation7]   ;;  %s286_s29 = smov 128  }
   0x8   :  { %s42_s28 = sshll.u32 %s285_s1, 4  ;;  %s287_s30 = smov 8   ;;  %s43_s28 = int_to_ptr.vmem [resolvable:$true] %s42_s28 }
   0x9   :  { %48 = dma.hbm_to_vmem [thread:$0]  %s41_s27, 2048, %s43_s28, [#allocation6], %s286_s29, %s286_s29, %s287_s30  }
   0xa   :  { %277 = dma.done.wait [#allocation3], 64  }
   0xb   :  { %278 = vsyncadd [#allocation3], 4294967232 }
   0xc   :  { %279 = dma.done.wait [#allocation6], 2064  }
   0xd   :  { %280 = vsyncadd [#allocation6], 4294965232  ;;  %v77_v0 = vld [vmem:[#allocation7 + $0x78] sm:$0xff]  ;;  %v76_v1 = vld [vmem:[#allocation7 + $0x70] sm:$0xff]  ;;  %s288_s5 = smov [#allocation8]   ;;  %s158_s9 = sshll.u32 %s333_s4, 4  ;;  %s159_s9 = int_to_ptr.hbm [resolvable:$true] %s158_s9 }
   0xe   :  { %78 = vmatpush.msra.mxu0 %v77_v0  ;;  %101 = vmatpush.msra.mxu1 %v77_v0  ;;  %v75_v2 = vld [vmem:[#allocation7 + $0x68] sm:$0xff]  ;;  %v74_v3 = vld [vmem:[#allocation7 + $0x60] sm:$0xff]  ;;  %v73_v4 = vld [vmem:[#allocation7 + $0x58] sm:$0xff]  ;;  %s156_s6 = sshll.u32 %s288_s5, 4  ;;  %s157_s6 = int_to_ptr.vmem [resolvable:$true] %s156_s6 }
   0xf   :  { %v72_v5 = vld [vmem:[#allocation7 + $0x50] sm:$0xff]  ;;  %v71_v6 = vld [vmem:[#allocation7 + $0x48] sm:$0xff]  ;;  %v70_v7 = vld [vmem:[#allocation7 + $0x40] sm:$0xff] }
  0x10   :  { %79 = vmatpush.msra.mxu0 %v76_v1  ;;  %102 = vmatpush.msra.mxu1 %v76_v1  ;;  %v69_v8 = vld [vmem:[#allocation7 + $0x38] sm:$0xff]  ;;  %v68_v9 = vld [vmem:[#allocation7 + $0x30] sm:$0xff]  ;;  %v67_v10 = vld [vmem:[#allocation7 + $0x28] sm:$0xff] }
  0x11   :  { %v66_v11 = vld [vmem:[#allocation7 + $0x20] sm:$0xff]  ;;  %v65_v12 = vld [vmem:[#allocation7 + $0x18] sm:$0xff]  ;;  %v64_v13 = vld [vmem:[#allocation7 + $0x10] sm:$0xff] }
  0x12   :  { %80 = vmatpush.msra.mxu0 %v75_v2  ;;  %103 = vmatpush.msra.mxu1 %v75_v2  ;;  %v63_v14 = vld [vmem:[#allocation7 + $0x8] sm:$0xff]  ;;  %v62_v15 = vld [vmem:[#allocation7] sm:$0xff]  ;;  %v61_v16 = vld [vmem:[#allocation2] sm:$0xf] }
  0x13   :  { %v175_v38 = vld [vmem:[#allocation5] ss:$0 sm:$0xff]  ;;  %v176_v40 = vld [vmem:[%s331_s2] ss:$0 sm:$0xff] }
  0x14   :  { %81 = vmatpush.msra.mxu0 %v74_v3  ;;  %104 = vmatpush.msra.mxu1 %v74_v3 }
  0x16   :  { %82 = vmatpush.msra.mxu0 %v73_v4  ;;  %105 = vmatpush.msra.mxu1 %v73_v4 }
  0x18   :  { %83 = vmatpush.msra.mxu0 %v72_v5  ;;  %106 = vmatpush.msra.mxu1 %v72_v5 }
  0x1a   :  { %84 = vmatpush.msra.mxu0 %v71_v6  ;;  %107 = vmatpush.msra.mxu1 %v71_v6 }
  0x1c   :  { %85 = vmatpush.msra.mxu0 %v70_v7  ;;  %108 = vmatpush.msra.mxu1 %v70_v7 }
  0x1e   :  { %86 = vmatpush.msra.mxu0 %v69_v8  ;;  %109 = vmatpush.msra.mxu1 %v69_v8 }
  0x20   :  { %87 = vmatpush.msra.mxu0 %v68_v9  ;;  %110 = vmatpush.msra.mxu1 %v68_v9 }
  0x22   :  { %88 = vmatpush.msra.mxu0 %v67_v10  ;;  %111 = vmatpush.msra.mxu1 %v67_v10 }
  0x24   :  { %89 = vmatpush.msra.mxu0 %v66_v11  ;;  %112 = vmatpush.msra.mxu1 %v66_v11 }
  0x26   :  { %90 = vmatpush.msra.mxu0 %v65_v12  ;;  %113 = vmatpush.msra.mxu1 %v65_v12 }
  0x28   :  { %91 = vmatpush.msra.mxu0 %v64_v13  ;;  %114 = vmatpush.msra.mxu1 %v64_v13 }
  0x2a   :  { %92 = vmatpush.msra.mxu0 %v63_v14  ;;  %115 = vmatpush.msra.mxu1 %v63_v14 }
  0x2c   :  { %93 = vmatpush.msra.mxu0 %v62_v15  ;;  %116 = vmatpush.msra.mxu1 %v62_v15 }
  0x2d   :  { %94 = vmatmul.f32.vlgmr.msra.gmra.mxu0 %v61_v16 }
  0xaa   :  { %v95_v17 = vpop.f32.mrf.mxu0 }
  0xab   :  { %v98_v18 = vmul.f32 0.03125, %v95_v17 }
  0xad   :  { %v99_v19 = vsub.f32 %v61_v16, %v98_v18 }
  0xaf   :  { %v100_v20 = vmul.f32 %v99_v19, %v99_v19 }
  0xb1   :  { %117 = vmatmul.f32.vlgmr.msra.gmra.mxu1 %v100_v20 }
 0x12e   :  { %v118_v21 = vpop.f32.mrf.mxu1 }
 0x12f   :  { %v121_v22 = vmul.f32 0.032258064, %v118_v21 }
 0x131   :  { %177 = vrsqrt.f32 %v121_v22  ;;  %vm129_vm0 = vcmp.eq.f32.partialorder %v121_v22, inf  ;;  %v132_v30 = vand.u32 2147483648, %v121_v22  ;;  %vm131_vm1 = vcmp.eq.f32.partialorder %v121_v22, 0.0 }
 0x137   :  { %v178_v23 = vpop.eup %177 }
 0x138   :  { %v123_v24 = vmul.f32 %v178_v23, %v121_v22 }
 0x13a   :  { %v124_v25 = vmul.f32 %v178_v23, %v123_v24 }
 0x13c   :  { %v125_v26 = vmul.f32 0.5, %v124_v25 }
 0x13e   :  { %v126_v27 = vsub.f32 1.5, %v125_v26 }
 0x140   :  { %v127_v28 = vmul.f32 %v178_v23, %v126_v27 }
 0x142   :  { %v128_v29 = vmul.f32 %v127_v28, %v121_v22 }
 0x144   :  { %v130_v31 = vsel %vm129_vm0, %v121_v22, %v128_v29 }
 0x145   :  { %v133_v32 = vsel %vm131_vm1, %v132_v30, %v130_v31 }
 0x146   :  { %v134_v33 = vadd.f32 1e-06, %v133_v32 }
 0x148   :  { %179 = vrcp.f32 %v134_v33 }
 0x14e   :  { %v180_v34 = vpop.eup %179 }
 0x14f   :  { %v136_v35 = vmul.f32 %v180_v34, %v134_v33 }
 0x151   :  { %v137_v36 = vsub.f32 2.0, %v136_v35 }
 0x153   :  { %v138_v37 = vmul.f32 %v180_v34, %v137_v36 }
 0x155   :  { %v140_v39 = vmul.f32 %v138_v37, %v99_v19 }
 0x157   :  { %v144_v41 = vmul.f32 %v175_v38, %v140_v39 }
 0x159   :  { %v149_v42 = vadd.f32 %v176_v40, %v144_v41 }
 0x15b   :  { %150 = vst [vmem:[#allocation8] sm:$0xf] %v149_v42 }
 0x15c   :  { %161 = dma.vmem_to_hbm [thread:$0]  %s157_s6, 64, %s159_s9, [#allocation4]  }
 0x15d   :  { %281 = dma.done.wait [#allocation4], 64  }
 0x15e   :  { %282 = vsyncadd [#allocation4], 4294967232 }
 0x15f   :  { %166 = vsyncpa [#allocation3], 1 }
 0x160   :  { %167 = vsyncpa [#allocation6], 1 }
 0x161   :  { %168 = vsyncpa [#allocation4], 1 }

</bundles_post_ra>
